<compile_context>
chip_gen: v6e
topology: v6e:2x2x1
jax: 0.10.0
libtpu: 0.0.40
codegen_flags: <defaults>
</compile_context>

<pallas_src>
import functools

import jax
import jax.numpy as jnp
from jax.experimental import pallas as pl
from jax.experimental.pallas import tpu as pltpu

_LANE = 128


def _round_up(x, m):
    return (x + m - 1) // m * m


def _cdiv(a, b):
    return -(-a // b)


# --------------------------------------------------------------------------
# Phase 1: (pool+conv) matmul, stream y to HBM, accumulate per-chunk BN stats.
# Grid = (num_chunks [parallel], tiles_per_chunk [arbitrary]).
# --------------------------------------------------------------------------
def _phase1_kernel(patches_ref, w2_ref, y_ref, sum_ref, ssq_ref, *,
                   m_total, tm, tiles_per_chunk, total_tiles):
    c = pl.program_id(0)          # parallel chunk (v7x: one per TensorCore)
    t = pl.program_id(1)          # streaming / reduction axis

    @pl.when(t == 0)
    def _():
        sum_ref[...] = jnp.zeros_like(sum_ref)
        ssq_ref[...] = jnp.zeros_like(ssq_ref)

    # (Cout, kk*Cin) @ (kk*Cin, TM) -> (Cout, TM).  Avg-pool (1/kk) is folded
    # into w2, so this single MXU call is pool+conv.  Conv bias is omitted:
    # it cancels exactly under training-mode BatchNorm.
    y = jnp.dot(w2_ref[...], patches_ref[...],
                preferred_element_type=jnp.float32)
    y_ref[...] = y

    gt = c * tiles_per_chunk + t          # unclamped global tile index

    # Interior tiles: fully valid -> unmasked stats (no iota/select VALU work).
    @pl.when(gt < total_tiles - 1)
    def _():
        sum_ref[...] += jnp.sum(y, axis=1, keepdims=True)[None]
        ssq_ref[...] += jnp.sum(y * y, axis=1, keepdims=True)[None]

    # Last (possibly ragged) tile and phantom duplicate steps: mask cols >= M.
    @pl.when(gt >= total_tiles - 1)
    def _():
        col = gt * tm + jax.lax.broadcasted_iota(jnp.int32, y.shape, 1)
        y_m = jnp.where(col < m_total, y, 0.0)
        sum_ref[...] += jnp.sum(y_m, axis=1, keepdims=True)[None]
        ssq_ref[...] += jnp.sum(y_m * y_m, axis=1, keepdims=True)[None]


# --------------------------------------------------------------------------
# Phase 2: combine chunk partials, normalize with per-channel scale/shift.
# --------------------------------------------------------------------------
def _phase2_kernel(y_ref, sum_ref, ssq_ref, gamma_ref, beta_ref, o_ref, *,
                   m_total, eps):
    inv_m = 1.0 / float(m_total)
    s = jnp.sum(sum_ref[...], axis=0)       # (Cout, 1): combine chunk partials
    ss = jnp.sum(ssq_ref[...], axis=0)
    mean = s * inv_m
    var = jnp.maximum(ss * inv_m - mean * mean, 0.0)   # biased var (training BN)
    scale = gamma_ref[...] * jax.lax.rsqrt(var + eps)
    shift = beta_ref[...] - mean * scale
    o_ref[...] = y_ref[...] * scale + shift            # one FMA per element


# --------------------------------------------------------------------------
# Wrapper: layout plumbing only.
# --------------------------------------------------------------------------
def _pool_patches_t(x_nchw, k, s):
    """(k*k*Cin, N*Ho*Wo) transposed patch slab; M on the lane (last) axis."""
    N, C, H, W = x_nchw.shape
    Ho = (H - k) // s + 1
    Wo = (W - k) // s + 1
    if s == k and H == Ho * k and W == Wo * k:
        # Non-overlapping, exactly covering windows: reshape/transpose only.
        p = x_nchw.reshape(N, C, Ho, k, Wo, k)
        p = jnp.transpose(p, (3, 5, 1, 0, 2, 4))        # (k, k, C, N, Ho, Wo)
    else:
        shifts = []
        for di in range(k):
            for dj in range(k):
                shifts.append(x_nchw[:, :,
                                     di:di + (Ho - 1) * s + 1:s,
                                     dj:dj + (Wo - 1) * s + 1:s])
        p = jnp.stack(shifts, axis=0)                    # (KK, N, C, Ho, Wo)
        p = jnp.transpose(p, (0, 2, 1, 3, 4))            # (KK, C, N, Ho, Wo)
    return p.reshape(k * k * C, N * Ho * Wo), (N, Ho, Wo)


@functools.partial(jax.jit,
                   static_argnames=("kernel_size", "stride", "eps", "tile_cols"))
def downsample_block(x_nchw, w, b, gamma, beta, *, kernel_size, stride,
                     eps=1e-5, tile_cols=None):
    """x_nchw: (N, Cin, H, W); w: (Cin, Cout); b/gamma/beta: (Cout,)."""
    del b  # Conv bias cancels exactly under training-mode BatchNorm.
    k, s = kernel_size, stride
    kk = k * k
    cin, cout = w.shape

    x_nchw = x_nchw.astype(jnp.float32)
    patches_t, (N, Ho, Wo) = _pool_patches_t(x_nchw, k, s)
    kkcin = kk * cin
    M = N * Ho * Wo

    # ---- M-tile (lane axis) sizing against per-step VMEM footprint --------
    # phase-1 residency ~= 2*kkcin*TM*4 (double-buffered patches)
    #                    + 2*cout*TM*4  (double-buffered y) bytes.
    # 10 MiB budget keeps us inside v5e's 16 MiB scoped default and v7x's
    # 32 MiB scoped / 64 MiB physical VMEM with headroom.
    bytes_per_col = 8 * (kkcin + cout) * 4
    vmem_budget = 10 * 1024 * 1024
    tm_cap = max(_LANE, (vmem_budget // bytes_per_col) // _LANE * _LANE)
    TM = min(tm_cap, 65536, _round_up(M, _LANE))
    if tile_cols is not None:                      # test hook / manual override
        TM = max(_LANE, _round_up(min(int(tile_cols), TM), _LANE))
    total_tiles = _cdiv(M, TM)

    # v7x megacore split: 2 parallel chunks of tiles; each accumulates its own
    # (Cout, 1) stats partial, combined in phase 2.
    NC = 2 if total_tiles >= 2 else 1
    TPC = _cdiv(total_tiles, NC)

    if NC * TPC == total_tiles:
        def tile_idx(c, t):
            return (0, c * TPC + t)
    else:
        def tile_idx(c, t):   # clamp phantom tail steps onto the last tile
            return (0, jnp.minimum(c * TPC + t, total_tiles - 1))

    # Fold the 1/kk pooling factor into the conv weight.
    w2t = (jnp.tile(w.T.astype(jnp.float32), (1, kk)) / float(kk))  # (Cout, kk*Cin)
    gamma_col = gamma.reshape(cout, 1).astype(jnp.float32)
    beta_col = beta.reshape(cout, 1).astype(jnp.float32)

    # ---- Phase 1: matmul, write y, accumulate per-chunk stats --------------
    p1_cost = pl.CostEstimate(
        flops=2 * cout * kkcin * M,
        transcendentals=0,
        bytes_accessed=4 * (kkcin * M + cout * M + cout * kkcin + 2 * NC * cout))

    y_flat, y_sum, y_ssq = pl.pallas_call(
        functools.partial(_phase1_kernel, m_total=M, tm=TM,
                          tiles_per_chunk=TPC, total_tiles=total_tiles),
        grid=(NC, TPC),
        in_specs=[
            pl.BlockSpec((kkcin, TM), tile_idx),                  # streamed patches
            pl.BlockSpec((cout, kkcin), lambda c, t: (0, 0)),     # weights (resident)
        ],
        out_specs=(
            pl.BlockSpec((cout, TM), tile_idx),                   # y tiles
            pl.BlockSpec((1, cout, 1), lambda c, t: (c, 0, 0)),   # per-chunk sum
            pl.BlockSpec((1, cout, 1), lambda c, t: (c, 0, 0)),   # per-chunk sumsq
        ),
        out_shape=(
            jax.ShapeDtypeStruct((cout, M), jnp.float32),
            jax.ShapeDtypeStruct((NC, cout, 1), jnp.float32),
            jax.ShapeDtypeStruct((NC, cout, 1), jnp.float32),
        ),
        compiler_params=pltpu.CompilerParams(
            dimension_semantics=("parallel", "arbitrary")),
        cost_estimate=p1_cost,
    )(patches_t, w2t)

    # ---- Phase 2: per-channel scale/shift normalization (in place on y) ----
    p2_cost = pl.CostEstimate(
        flops=2 * cout * M,
        transcendentals=cout,
        bytes_accessed=4 * (2 * cout * M + 2 * NC * cout + 2 * cout))

    out_flat = pl.pallas_call(
        functools.partial(_phase2_kernel, m_total=M, eps=eps),
        grid=(total_tiles,),
        in_specs=[
            pl.BlockSpec((cout, TM), lambda i: (0, i)),
            pl.BlockSpec((NC, cout, 1), lambda i: (0, 0, 0)),
            pl.BlockSpec((NC, cout, 1), lambda i: (0, 0, 0)),
            pl.BlockSpec((cout, 1), lambda i: (0, 0)),
            pl.BlockSpec((cout, 1), lambda i: (0, 0)),
        ],
        out_specs=pl.BlockSpec((cout, TM), lambda i: (0, i)),
        out_shape=jax.ShapeDtypeStruct((cout, M), jnp.float32),
        input_output_aliases={0: 0},                       # write over y
        compiler_params=pltpu.CompilerParams(
            dimension_semantics=("parallel",)),            # shards on v7x 2 TCs
        cost_estimate=p2_cost,
    )(y_flat, y_sum, y_ssq, gamma_col, beta_col)

    out = out_flat.reshape(cout, N, Ho, Wo)
    return jnp.transpose(out, (1, 0, 2, 3))                # NCHW (module semantics)


# --------------------------------------------------------------------------
# Pure-JAX reference (AvgPool2d -> 1x1 Conv -> training-mode BatchNorm2d).
# --------------------------------------------------------------------------
def _reference(x_nchw, w, b, gamma, beta, *, kernel_size, stride, eps=1e-5):
    k, s = kernel_size, stride
    pooled = jax.lax.reduce_window(
        x_nchw, 0.0, jax.lax.add,
        window_dimensions=(1, 1, k, k),
        window_strides=(1, 1, s, s),
        padding="VALID") / float(k * k)
    y = jnp.einsum("nchw,co->nohw", pooled, w) + b[None, :, None, None]
    mean = jnp.mean(y, axis=(0, 2, 3), keepdims=True)
    var = jnp.mean((y - mean) ** 2, axis=(0, 2, 3), keepdims=True)
    y_hat = (y - mean) / jnp.sqrt(var + eps)
    return y_hat * gamma[None, :, None, None] + beta[None, :, None, None]


if __name__ == "__main__":
    def _check(N, Cin, H, W, Cout, k, s, tile_cols=None):
        key = jax.random.PRNGKey(0)
        kx, kw, kb, kg, kbt = jax.random.split(key, 5)
        x = jax.random.normal(kx, (N, Cin, H, W), dtype=jnp.float32)
        # PyTorch Conv2d weight (Cout, Cin, 1, 1) stored here as (Cin, Cout).
        w = jax.random.normal(kw, (Cin, Cout), dtype=jnp.float32) * 0.1
        b = jax.random.normal(kb, (Cout,), dtype=jnp.float32) * 0.1
        gamma = 1.0 + 0.1 * jax.random.normal(kg, (Cout,), dtype=jnp.float32)
        beta = 0.1 * jax.random.normal(kbt, (Cout,), dtype=jnp.float32)

        out = downsample_block(x, w, b, gamma, beta, kernel_size=k, stride=s,
                               tile_cols=tile_cols)
        out = jax.block_until_ready(out)
        ref = _reference(x, w, b, gamma, beta, kernel_size=k, stride=s)
        Ho = (H - k) // s + 1
        Wo = (W - k) // s + 1
        assert out.shape == (N, Cout, Ho, Wo), out.shape
        assert jnp.allclose(out, ref, atol=1e-4, rtol=1e-4), \
            "mismatch vs reference"

    # Primary small config (module-consistent shapes): N=2, Cin=4, 16x16.
    _check(N=2, Cin=4, H=16, W=16, Cout=8, k=2, s=2)
    # Multi-tile / two-chunk / ragged-tail path (forced small tile for test).
    _check(N=2, Cin=4, H=40, W=40, Cout=8, k=2, s=2, tile_cols=128)
    # Overlapping-window path (stride < kernel_size).
    _check(N=2, Cin=4, H=16, W=16, Cout=8, k=3, s=2)

    print("KERNEL_OK")
</pallas_src>

<mosaic_0001>
module attributes {stable_mosaic.version = 11 : i64} {
  func.func @_phase1_kernel(%arg0: i32, %arg1: i32, %arg2: memref<16x128xf32, #tpu.memory_space<vmem>>, %arg3: memref<8x16xf32, #tpu.memory_space<vmem>>, %arg4: memref<8x128xf32, #tpu.memory_space<vmem>>, %arg5: memref<1x8x1xf32, #tpu.memory_space<vmem>>, %arg6: memref<1x8x1xf32, #tpu.memory_space<vmem>>) attributes {dimension_semantics = [#tpu.dimension_semantics<parallel>, #tpu.dimension_semantics<arbitrary>], iteration_bounds = array<i64: 1, 1>, scalar_prefetch = 0 : i64, scratch_operands = 0 : i64, tpu.core_type = #tpu.core_type<tc>, window_params = [{transform_indices = @transform_0, window_bounds = array<i64: 16, 128>}, {pipeline_mode = #tpu.pipeline_mode<synchronous>, transform_indices = @transform_1, window_bounds = array<i64: 8, 16>}, {transform_indices = @transform_2, window_bounds = array<i64: 8, 128>}, {transform_indices = @transform_3, window_bounds = array<i64: 1, 8, 1>}, {transform_indices = @transform_4, window_bounds = array<i64: 1, 8, 1>}]} {
    %c0_i32 = arith.constant 0 : i32
    %0 = arith.cmpi eq, %arg1, %c0_i32 : i32
    %1 = arith.extui %0 : i1 to i32
    %c0_i32_0 = arith.constant 0 : i32
    %2 = arith.cmpi ne, %1, %c0_i32_0 : i32
    scf.if %2 {
      %cst_10 = arith.constant 0.000000e+00 : f32
      %15 = vector.broadcast %cst_10 : f32 to vector<1x8x1xf32>
      %c0_11 = arith.constant 0 : index
      %c0_12 = arith.constant 0 : index
      %c0_13 = arith.constant 0 : index
      %16 = vector.load %arg5[%c0_11, %c0_12, %c0_13] : memref<1x8x1xf32, #tpu.memory_space<vmem>>, vector<1x8x1xf32>
      tpu.vector_store %arg5[%c0_11, %c0_12, %c0_13], %15 {strides = array<i32>} : memref<1x8x1xf32, #tpu.memory_space<vmem>>, vector<1x8x1xf32>,
      %cst_14 = arith.constant 0.000000e+00 : f32
      %17 = vector.broadcast %cst_14 : f32 to vector<1x8x1xf32>
      %c0_15 = arith.constant 0 : index
      %c0_16 = arith.constant 0 : index
      %c0_17 = arith.constant 0 : index
      %18 = vector.load %arg6[%c0_15, %c0_16, %c0_17] : memref<1x8x1xf32, #tpu.memory_space<vmem>>, vector<1x8x1xf32>
      tpu.vector_store %arg6[%c0_15, %c0_16, %c0_17], %17 {strides = array<i32>} : memref<1x8x1xf32, #tpu.memory_space<vmem>>, vector<1x8x1xf32>,
    } else {
    }
    %c0 = arith.constant 0 : index
    %c0_1 = arith.constant 0 : index
    %3 = vector.load %arg3[%c0, %c0_1] : memref<8x16xf32, #tpu.memory_space<vmem>>, vector<8x16xf32>
    %c0_2 = arith.constant 0 : index
    %c0_3 = arith.constant 0 : index
    %4 = vector.load %arg2[%c0_2, %c0_3] : memref<16x128xf32, #tpu.memory_space<vmem>>, vector<16x128xf32>
    %cst = arith.constant dense<0.000000e+00> : vector<8x128xf32>
    %5 = tpu.matmul %3, %4, %cst {dimension_numbers = #tpu.dot_dimension_numbers<[1], [0], [0], [1], [0, 0, 1, 1], [], []>} : vector<8x16xf32>, vector<16x128xf32>, vector<8x128xf32> -> vector<8x128xf32>
    %c0_4 = arith.constant 0 : index
    %c0_5 = arith.constant 0 : index
    %6 = vector.load %arg4[%c0_4, %c0_5] : memref<8x128xf32, #tpu.memory_space<vmem>>, vector<8x128xf32>
    tpu.vector_store %arg4[%c0_4, %c0_5], %5 {strides = array<i32>} : memref<8x128xf32, #tpu.memory_space<vmem>>, vector<8x128xf32>,
    %c1_i32 = arith.constant 1 : i32
    %7 = arith.muli %arg0, %c1_i32 : i32
    %8 = arith.addi %7, %arg1 : i32
    %c0_i32_6 = arith.constant 0 : i32
    %9 = arith.cmpi slt, %8, %c0_i32_6 : i32
    %10 = arith.extui %9 : i1 to i32
    %c0_i32_7 = arith.constant 0 : i32
    %11 = arith.cmpi ne, %10, %c0_i32_7 : i32
    scf.if %11 {
      %c0_10 = arith.constant 0 : index
      %c0_11 = arith.constant 0 : index
      %c0_12 = arith.constant 0 : index
      %15 = vector.load %arg5[%c0_10, %c0_11, %c0_12] : memref<1x8x1xf32, #tpu.memory_space<vmem>>, vector<1x8x1xf32>
      %cst_13 = arith.constant dense<0.000000e+00> : vector<8xf32>
      %16 = vector.multi_reduction <add>, %5, %cst_13 [1] : vector<8x128xf32> to vector<8xf32>
      %17 = vector.shape_cast %16 : vector<8xf32> to vector<8x1xf32>
      %18 = vector.shape_cast %17 : vector<8x1xf32> to vector<1x8x1xf32>
      %19 = arith.addf %15, %18 : vector<1x8x1xf32>
      %c0_14 = arith.constant 0 : index
      %c0_15 = arith.constant 0 : index
      %c0_16 = arith.constant 0 : index
      %20 = vector.load %arg5[%c0_14, %c0_15, %c0_16] : memref<1x8x1xf32, #tpu.memory_space<vmem>>, vector<1x8x1xf32>
      tpu.vector_store %arg5[%c0_14, %c0_15, %c0_16], %19 {strides = array<i32>} : memref<1x8x1xf32, #tpu.memory_space<vmem>>, vector<1x8x1xf32>,
      %c0_17 = arith.constant 0 : index
      %c0_18 = arith.constant 0 : index
      %c0_19 = arith.constant 0 : index
      %21 = vector.load %arg6[%c0_17, %c0_18, %c0_19] : memref<1x8x1xf32, #tpu.memory_space<vmem>>, vector<1x8x1xf32>
      %22 = arith.mulf %5, %5 : vector<8x128xf32>
      %cst_20 = arith.constant dense<0.000000e+00> : vector<8xf32>
      %23 = vector.multi_reduction <add>, %22, %cst_20 [1] : vector<8x128xf32> to vector<8xf32>
      %24 = vector.shape_cast %23 : vector<8xf32> to vector<8x1xf32>
      %25 = vector.shape_cast %24 : vector<8x1xf32> to vector<1x8x1xf32>
      %26 = arith.addf %21, %25 : vector<1x8x1xf32>
      %c0_21 = arith.constant 0 : index
      %c0_22 = arith.constant 0 : index
      %c0_23 = arith.constant 0 : index
      %27 = vector.load %arg6[%c0_21, %c0_22, %c0_23] : memref<1x8x1xf32, #tpu.memory_space<vmem>>, vector<1x8x1xf32>
      tpu.vector_store %arg6[%c0_21, %c0_22, %c0_23], %26 {strides = array<i32>} : memref<1x8x1xf32, #tpu.memory_space<vmem>>, vector<1x8x1xf32>,
    } else {
    }
    %c0_i32_8 = arith.constant 0 : i32
    %12 = arith.cmpi sge, %8, %c0_i32_8 : i32
    %13 = arith.extui %12 : i1 to i32
    %c0_i32_9 = arith.constant 0 : i32
    %14 = arith.cmpi ne, %13, %c0_i32_9 : i32
    scf.if %14 {
      %c128_i32 = arith.constant 128 : i32
      %15 = arith.muli %8, %c128_i32 : i32
      %16 = tpu.iota {dimensions = array<i32: 1>} : vector<8x128xi32>
      %17 = vector.broadcast %15 : i32 to vector<8x128xi32>
      %18 = arith.addi %17, %16 : vector<8x128xi32>
      %c128_i32_10 = arith.constant 128 : i32
      %19 = vector.broadcast %c128_i32_10 : i32 to vector<8x128xi32>
      %20 = arith.cmpi slt, %18, %19 : vector<8x128xi32>
      %cst_11 = arith.constant 0.000000e+00 : f32
      %21 = vector.broadcast %cst_11 : f32 to vector<8x128xf32>
      %22 = arith.select %20, %5, %21 : vector<8x128xi1>, vector<8x128xf32>
      %c0_12 = arith.constant 0 : index
      %c0_13 = arith.constant 0 : index
      %c0_14 = arith.constant 0 : index
      %23 = vector.load %arg5[%c0_12, %c0_13, %c0_14] : memref<1x8x1xf32, #tpu.memory_space<vmem>>, vector<1x8x1xf32>
      %cst_15 = arith.constant dense<0.000000e+00> : vector<8xf32>
      %24 = vector.multi_reduction <add>, %22, %cst_15 [1] : vector<8x128xf32> to vector<8xf32>
      %25 = vector.shape_cast %24 : vector<8xf32> to vector<8x1xf32>
      %26 = vector.shape_cast %25 : vector<8x1xf32> to vector<1x8x1xf32>
      %27 = arith.addf %23, %26 : vector<1x8x1xf32>
      %c0_16 = arith.constant 0 : index
      %c0_17 = arith.constant 0 : index
      %c0_18 = arith.constant 0 : index
      %28 = vector.load %arg5[%c0_16, %c0_17, %c0_18] : memref<1x8x1xf32, #tpu.memory_space<vmem>>, vector<1x8x1xf32>
      tpu.vector_store %arg5[%c0_16, %c0_17, %c0_18], %27 {strides = array<i32>} : memref<1x8x1xf32, #tpu.memory_space<vmem>>, vector<1x8x1xf32>,
      %c0_19 = arith.constant 0 : index
      %c0_20 = arith.constant 0 : index
      %c0_21 = arith.constant 0 : index
      %29 = vector.load %arg6[%c0_19, %c0_20, %c0_21] : memref<1x8x1xf32, #tpu.memory_space<vmem>>, vector<1x8x1xf32>
      %30 = arith.mulf %22, %22 : vector<8x128xf32>
      %cst_22 = arith.constant dense<0.000000e+00> : vector<8xf32>
      %31 = vector.multi_reduction <add>, %30, %cst_22 [1] : vector<8x128xf32> to vector<8xf32>
      %32 = vector.shape_cast %31 : vector<8xf32> to vector<8x1xf32>
      %33 = vector.shape_cast %32 : vector<8x1xf32> to vector<1x8x1xf32>
      %34 = arith.addf %29, %33 : vector<1x8x1xf32>
      %c0_23 = arith.constant 0 : index
      %c0_24 = arith.constant 0 : index
      %c0_25 = arith.constant 0 : index
      %35 = vector.load %arg6[%c0_23, %c0_24, %c0_25] : memref<1x8x1xf32, #tpu.memory_space<vmem>>, vector<1x8x1xf32>
      tpu.vector_store %arg6[%c0_23, %c0_24, %c0_25], %34 {strides = array<i32>} : memref<1x8x1xf32, #tpu.memory_space<vmem>>, vector<1x8x1xf32>,
    } else {
    }
    return
  }
  func.func @transform_0(%arg0: i32, %arg1: i32) -> (i32, i32) {
    %c1_i32 = arith.constant 1 : i32
    %0 = arith.muli %arg0, %c1_i32 : i32
    %1 = arith.addi %0, %arg1 : i32
    %c0_i32 = arith.constant 0 : i32
    %c0_i32_0 = arith.constant 0 : i32
    return %c0_i32, %1 : i32, i32
  }
  func.func @transform_1(%arg0: i32, %arg1: i32) -> (i32, i32) {
    %c0_i32 = arith.constant 0 : i32
    %c0_i32_0 = arith.constant 0 : i32
    %c0_i32_1 = arith.constant 0 : i32
    return %c0_i32, %c0_i32_0 : i32, i32
  }
  func.func @transform_2(%arg0: i32, %arg1: i32) -> (i32, i32) {
    %c1_i32 = arith.constant 1 : i32
    %0 = arith.muli %arg0, %c1_i32 : i32
    %1 = arith.addi %0, %arg1 : i32
    %c0_i32 = arith.constant 0 : i32
    %c0_i32_0 = arith.constant 0 : i32
    return %c0_i32, %1 : i32, i32
  }
  func.func @transform_3(%arg0: i32, %arg1: i32) -> (i32, i32, i32) {
    %c0_i32 = arith.constant 0 : i32
    %c0_i32_0 = arith.constant 0 : i32
    %c0_i32_1 = arith.constant 0 : i32
    return %arg0, %c0_i32, %c0_i32_0 : i32, i32, i32
  }
  func.func @transform_4(%arg0: i32, %arg1: i32) -> (i32, i32, i32) {
    %c0_i32 = arith.constant 0 : i32
    %c0_i32_0 = arith.constant 0 : i32
    %c0_i32_1 = arith.constant 0 : i32
    return %arg0, %c0_i32, %c0_i32_0 : i32, i32, i32
  }
}

module attributes {stable_mosaic.version = 11 : i64} {
  func.func @_phase2_kernel(%arg0: i32, %arg1: memref<8x128xf32, #tpu.memory_space<vmem>>, %arg2: memref<1x8x1xf32, #tpu.memory_space<vmem>>, %arg3: memref<1x8x1xf32, #tpu.memory_space<vmem>>, %arg4: memref<8x1xf32, #tpu.memory_space<vmem>>, %arg5: memref<8x1xf32, #tpu.memory_space<vmem>>, %arg6: memref<8x128xf32, #tpu.memory_space<vmem>>) attributes {dimension_semantics = [#tpu.dimension_semantics<parallel>], iteration_bounds = array<i64: 1>, scalar_prefetch = 0 : i64, scratch_operands = 0 : i64, tpu.core_type = #tpu.core_type<tc>, window_params = [{transform_indices = @transform_0, window_bounds = array<i64: 8, 128>}, {pipeline_mode = #tpu.pipeline_mode<synchronous>, transform_indices = @transform_1, window_bounds = array<i64: 1, 8, 1>}, {pipeline_mode = #tpu.pipeline_mode<synchronous>, transform_indices = @transform_2, window_bounds = array<i64: 1, 8, 1>}, {pipeline_mode = #tpu.pipeline_mode<synchronous>, transform_indices = @transform_3, window_bounds = array<i64: 8, 1>}, {pipeline_mode = #tpu.pipeline_mode<synchronous>, transform_indices = @transform_4, window_bounds = array<i64: 8, 1>}, {transform_indices = @transform_5, window_bounds = array<i64: 8, 128>}]} {
    %c0 = arith.constant 0 : index
    %c0_0 = arith.constant 0 : index
    %c0_1 = arith.constant 0 : index
    %0 = vector.load %arg2[%c0, %c0_0, %c0_1] : memref<1x8x1xf32, #tpu.memory_space<vmem>>, vector<1x8x1xf32>
    %cst = arith.constant dense<0.000000e+00> : vector<8x1xf32>
    %1 = vector.multi_reduction <add>, %0, %cst [0] : vector<1x8x1xf32> to vector<8x1xf32>
    %c0_2 = arith.constant 0 : index
    %c0_3 = arith.constant 0 : index
    %c0_4 = arith.constant 0 : index
    %2 = vector.load %arg3[%c0_2, %c0_3, %c0_4] : memref<1x8x1xf32, #tpu.memory_space<vmem>>, vector<1x8x1xf32>
    %cst_5 = arith.constant dense<0.000000e+00> : vector<8x1xf32>
    %3 = vector.multi_reduction <add>, %2, %cst_5 [0] : vector<1x8x1xf32> to vector<8x1xf32>
    %cst_6 = arith.constant 7.812500e-03 : f32
    %4 = vector.broadcast %cst_6 : f32 to vector<8x1xf32>
    %5 = arith.mulf %1, %4 : vector<8x1xf32>
    %cst_7 = arith.constant 7.812500e-03 : f32
    %6 = vector.broadcast %cst_7 : f32 to vector<8x1xf32>
    %7 = arith.mulf %3, %6 : vector<8x1xf32>
    %8 = arith.mulf %5, %5 : vector<8x1xf32>
    %9 = arith.subf %7, %8 : vector<8x1xf32>
    %cst_8 = arith.constant 0.000000e+00 : f32
    %10 = vector.broadcast %cst_8 : f32 to vector<8x1xf32>
    %11 = arith.maximumf %9, %10 : vector<8x1xf32>
    %c0_9 = arith.constant 0 : index
    %c0_10 = arith.constant 0 : index
    %12 = vector.load %arg4[%c0_9, %c0_10] : memref<8x1xf32, #tpu.memory_space<vmem>>, vector<8x1xf32>
    %cst_11 = arith.constant 9.99999974E-6 : f32
    %13 = vector.broadcast %cst_11 : f32 to vector<8x1xf32>
    %14 = arith.addf %11, %13 : vector<8x1xf32>
    %15 = math.rsqrt %14 : vector<8x1xf32>
    %16 = arith.mulf %12, %15 : vector<8x1xf32>
    %c0_12 = arith.constant 0 : index
    %c0_13 = arith.constant 0 : index
    %17 = vector.load %arg5[%c0_12, %c0_13] : memref<8x1xf32, #tpu.memory_space<vmem>>, vector<8x1xf32>
    %18 = arith.mulf %5, %16 : vector<8x1xf32>
    %19 = arith.subf %17, %18 : vector<8x1xf32>
    %c0_14 = arith.constant 0 : index
    %c0_15 = arith.constant 0 : index
    %20 = vector.load %arg1[%c0_14, %c0_15] : memref<8x128xf32, #tpu.memory_space<vmem>>, vector<8x128xf32>
    %21 = vector.broadcast %16 : vector<8x1xf32> to vector<8x128xf32>
    %22 = arith.mulf %20, %21 : vector<8x128xf32>
    %23 = vector.broadcast %19 : vector<8x1xf32> to vector<8x128xf32>
    %24 = arith.addf %22, %23 : vector<8x128xf32>
    %c0_16 = arith.constant 0 : index
    %c0_17 = arith.constant 0 : index
    %25 = vector.load %arg6[%c0_16, %c0_17] : memref<8x128xf32, #tpu.memory_space<vmem>>, vector<8x128xf32>
    tpu.vector_store %arg6[%c0_16, %c0_17], %24 {strides = array<i32>} : memref<8x128xf32, #tpu.memory_space<vmem>>, vector<8x128xf32>,
    return
  }
  func.func @transform_0(%arg0: i32) -> (i32, i32) {
    %c0_i32 = arith.constant 0 : i32
    %c0_i32_0 = arith.constant 0 : i32
    return %c0_i32, %arg0 : i32, i32
  }
  func.func @transform_1(%arg0: i32) -> (i32, i32, i32) {
    %c0_i32 = arith.constant 0 : i32
    %c0_i32_0 = arith.constant 0 : i32
    %c0_i32_1 = arith.constant 0 : i32
    %c0_i32_2 = arith.constant 0 : i32
    return %c0_i32, %c0_i32_0, %c0_i32_1 : i32, i32, i32
  }
  func.func @transform_2(%arg0: i32) -> (i32, i32, i32) {
    %c0_i32 = arith.constant 0 : i32
    %c0_i32_0 = arith.constant 0 : i32
    %c0_i32_1 = arith.constant 0 : i32
    %c0_i32_2 = arith.constant 0 : i32
    return %c0_i32, %c0_i32_0, %c0_i32_1 : i32, i32, i32
  }
  func.func @transform_3(%arg0: i32) -> (i32, i32) {
    %c0_i32 = arith.constant 0 : i32
    %c0_i32_0 = arith.constant 0 : i32
    %c0_i32_1 = arith.constant 0 : i32
    return %c0_i32, %c0_i32_0 : i32, i32
  }
  func.func @transform_4(%arg0: i32) -> (i32, i32) {
    %c0_i32 = arith.constant 0 : i32
    %c0_i32_0 = arith.constant 0 : i32
    %c0_i32_1 = arith.constant 0 : i32
    return %c0_i32, %c0_i32_0 : i32, i32
  }
  func.func @transform_5(%arg0: i32) -> (i32, i32) {
    %c0_i32 = arith.constant 0 : i32
    %c0_i32_0 = arith.constant 0 : i32
    return %c0_i32, %arg0 : i32, i32
  }
}

</mosaic_0001>

<bundles_post_ra>
// kernel: downsample_block.3
= control target key start
LH: loop header
LB: loop body
LE: loop exit
PB: predicated region body
PF: predicated region fallthrough
CT: control target
= control target key end

     0   :  { %v58_v0 = vmov 0   ;;  %s107_s1 = inlined_call_operand.vmem [shape: f32[1,8,1], index: 1, kind: input, shape index: {}]   ;;  %s108_s2 = inlined_call_operand.vmem [shape: f32[1,8,1], index: 2, kind: input, shape index: {}]   ;;  %s109_s3 = inlined_call_operand.vmem [shape: f32[8,1], index: 3, kind: input, shape index: {}]   ;;  %s110_s4 = inlined_call_operand.vmem [shape: f32[8,1], index: 4, kind: input, shape index: {}]   ;;  %s111_s0 = inlined_call_operand.vmem [shape: f32[8,128], index: 0, kind: input, shape index: {}, may-alias: {0,5}]   ;;  %s112_s5 = inlined_call_operand.vmem [shape: f32[8,128], index: 5, kind: output, shape index: {}, may-alias: {0,5}]  }
   0x1   :  { %55 = vset.pattern.permute.xlu0 %v58_v0  ;;  %v20_v1 = vld [vmem:[%s107_s1] sm:$0xff] }
   0x2   :  { %v22_v2 = vld [vmem:[%s108_s2] sm:$0xff]  ;;  %v24_v3 = vmul.f32 0.0078125, %v20_v1 }
   0x3   :  { %v25_v4 = vmul.f32 0.0078125, %v22_v2  ;;  %v29_v9 = vld [vmem:[%s109_s3] sm:$0xff] }
   0x4   :  { %v26_v5 = vmul.f32 %v24_v3, %v24_v3  ;;  %v33_v12 = vld [vmem:[%s110_s4] sm:$0xff] }
   0x5   :  { %v36_v16 = vld [vmem:[%s111_s0] sm:$0xff] }
   0x6   :  { %v27_v6 = vsub.f32 %v25_v4, %v26_v5 }
   0x8   :  { %v28_v7 = vmax.f32 %v27_v6, 0.0 }
   0xa   :  { %v30_v8 = vadd.f32 1e-05, %v28_v7 }
   0xc   :  { %56 = vrsqrt.f32 %v30_v8 }
  0x19   :  { %v57_v10 = vpop.eup %56 }
  0x1a   :  { %v32_v11 = vmul.f32 %v57_v10, %v29_v9 }
  0x1c   :  { %39 = vperm.xlu0 %55, %v32_v11   ;;  %v34_v13 = vmul.f32 %v32_v11, %v24_v3 }
  0x1e   :  { %v35_v14 = vsub.f32 %v33_v12, %v34_v13 }
  0x20   :  { %45 = vperm.xlu0 %55, %v35_v14  }
  0x97   :  { %v40_v15 = vpop.permute.xlu0 %39 }
  0x98   :  { %v42_v17 = vmul.f32 %v40_v15, %v36_v16 }
  0x9b   :  { %v46_v18 = vpop.permute.xlu0 %45 }
  0x9c   :  { %v48_v19 = vadd.f32 %v46_v18, %v42_v17 }
  0x9e   :  { %49 = vst [vmem:[%s112_s5] sm:$0xff] %v48_v19 }

// kernel: downsample_block.2
= control target key start
LH: loop header
LB: loop body
LE: loop exit
PB: predicated region body
PF: predicated region fallthrough
CT: control target
= control target key end

     0   :  { %v217_v0 = vmov 0.0   ;;  %vm218_vm0 = vmmov 0   ;;  %vm52_vm1 = vcmask 130048   ;;  %vm46_vm2 = vcmask 7168   ;;  %s278_s0 = inlined_call_operand.vmem [shape: f32[16,128], index: 0, kind: input, shape index: {}]   ;;  %s279_s1 = inlined_call_operand.vmem [shape: f32[8,16], index: 1, kind: input, shape index: {}]   ;;  %s280_s3 = inlined_call_operand.vmem [shape: f32[1,8,1], index: 3, kind: output, shape index: {1}]   ;;  %s281_s2 = inlined_call_operand.vmem [shape: f32[8,128], index: 2, kind: output, shape index: {0}]   ;;  %s282_s4 = inlined_call_operand.vmem [shape: f32[1,8,1], index: 4, kind: output, shape index: {2}]  }
   0x1   :  { %208 = vmatprep.subr.mxu0 %v217_v0  ;;  %v51_v1 = vld [vmem:[%s278_s0 + $0x8] sm:$0xff]  ;;  %v50_v2 = vld [vmem:[%s278_s0] sm:$0xff]  ;;  %212 = vmatprep.mubr.msk.f32.mxu0 %vm218_vm0, %v217_v0  ;;  %47 = vst.msk [vmem:[%s280_s3] sm:$0xff] %vm46_vm2, %v217_v0  ;;  %48 = vst.msk [vmem:[%s282_s4] sm:$0xff] %vm46_vm2, %v217_v0 }
   0x2   :  { %209 = vmatpush3.msra.mxu0 %v51_v1  ;;  %v49_v3 = vld [vmem:[%s279_s1] sm:$0xff] }
   0x3   :  { %210 = vmatprep.subr.mxu0 %v217_v0 }
   0x4   :  { %211 = vmatpush3.msra.mxu0 %v50_v2 }
   0x5   :  { %213 = vmatmul.mubr.msk.f32.vlgmr.msra.gmra.mxu0 %vm52_vm1, %v49_v3 }
   0x8   :  { %v155_v7 = vld [vmem:[%s280_s3] sm:$0xff] }
   0x9   :  { %v161_v10 = vld [vmem:[%s282_s4] sm:$0xff] }
  0xc5   :  { %v122_v4 = vpop.f32.mrf.mxu0 }
  0xc6   :  { %126 = vst [vmem:[%s281_s2] sm:$0xff] %v122_v4  ;;  %156 = vadd.xlane.f32.xlu0 %v122_v4  ;;  %v162_v6 = vmul.f32 %v122_v4, %v122_v4 }
  0xc7   :  { %v214_v5 = vpop.f32.mrf.mxu0 }
  0xca   :  { %163 = vadd.xlane.f32.xlu0 %v162_v6 }
 0x14f   :  { %v157_v8 = vpop.xlane.xlu0 %156 }
 0x150   :  { %v158_v9 = vadd.f32 %v157_v8, %v155_v7 }
 0x152   :  { %160 = vst.msk [vmem:[%s280_s3] sm:$0xff] %vm46_vm2, %v158_v9 }
 0x153   :  { %v164_v11 = vpop.xlane.xlu0 %163 }
 0x154   :  { %v165_v12 = vadd.f32 %v164_v11, %v161_v10 }
 0x156   :  { %166 = vst.msk [vmem:[%s282_s4] sm:$0xff] %vm46_vm2, %v165_v12 }

</bundles_post_ra>
